<compile_context>
chip_gen: v5e
topology: v5e:2x2
jax: 0.10.0
libtpu: 0.0.40
codegen_flags: <defaults>
</compile_context>

<pallas_src>
import functools
import math

import jax
import jax.numpy as jnp
from jax import lax
from jax.experimental import pallas as pl
from jax.experimental.pallas import tpu as pltpu


def _double_conv_kernel(x_ref, bw1_ref, bw2_ref, g1_ref, be1_ref, g2_ref, be2_ref,
                        out_ref, xp_ref, h1p_ref, *, width, cout):
    # x_ref:   (N, H, W*Cin)        bf16 lane-dense input (no halo).
    # bw1_ref: (3, W*Cin,  W*Cout)  bf16 banded conv1 weight, one band per kh tap.
    # bw2_ref: (3, W*Cout, W*Cout)  bf16 banded conv2 weight.
    # g*/be*:  (1, W*Cout)          f32 gamma/beta, pre-tiled to the lane layout.
    # out_ref: (N*H, W*Cout)        bf16 lane-dense output slab.
    # xp_ref:  (N, H+2, W*Cin)      bf16 scratch: input with zeroed H-halo rows.
    # h1p_ref: (N, H+2, W*Cout)     bf16 scratch: conv1 activations with zeroed H-halo.
    n, h, w_cin = x_ref.shape
    w_cout = width * cout
    rows = n * h
    eps = 1e-5
    inv_count = 1.0 / float(rows * width)          # BN count per channel = N*H*W

    def conv3x3(src_ref, bw_ref):
        # Three accumulated matmuls (one per kh tap); the kw taps and the padding=1
        # zero border along W are already folded into the banded weight.
        acc = None
        for kh in range(3):                                    # static unroll
            lhs = src_ref[:, kh:kh + h, :].reshape(rows, -1)   # row-shifted window
            part = jnp.dot(lhs, bw_ref[kh], preferred_element_type=jnp.float32)
            acc = part if acc is None else acc + part
        return acc                                             # (rows, W*Cout) f32

    def channel_totals(v):
        # v: (1, width*cout).  Log-tree of cyclic lane rolls; afterwards EVERY lane
        # group holds the per-channel total, i.e. the result is already re-broadcast
        # to the lane-dense layout.  Requires width to be a power of two.
        s = cout
        while s < w_cout:
            v = v + pltpu.roll(v, shift=s, axis=1)
            s *= 2
        return v

    def bn_relu(acc, g_ref, be_ref):
        # Training-mode (biased) batch stats over (N, H, W) per channel, single pass
        # via sum / sum-of-squares in f32 (cancellation is benign at these magnitudes),
        # folded into one per-channel scale + shift before the ReLU.
        col_sum = jnp.sum(acc, axis=0, keepdims=True)          # (1, W*Cout)
        col_sqs = jnp.sum(acc * acc, axis=0, keepdims=True)
        mean = channel_totals(col_sum) * inv_count             # lane-tiled per channel
        ex2 = channel_totals(col_sqs) * inv_count
        var = ex2 - mean * mean
        scale = g_ref[...] * lax.rsqrt(var + eps)              # (1, W*Cout)
        shift = be_ref[...] - mean * scale
        return jnp.maximum(acc * scale + shift, 0.0)           # (rows, W*Cout) f32

    # ---- conv1: build the H-halo'd input once in VMEM scratch ----
    xp_ref[:, 0:1, :] = jnp.zeros((n, 1, w_cin), xp_ref.dtype)
    xp_ref[:, h + 1:h + 2, :] = jnp.zeros((n, 1, w_cin), xp_ref.dtype)
    xp_ref[:, 1:h + 1, :] = x_ref[...]
    h1 = bn_relu(conv3x3(xp_ref, bw1_ref), g1_ref, be1_ref)

    # ---- conv2: intermediate goes straight into a halo'd VMEM scratch (bf16) ----
    h1p_ref[:, 0:1, :] = jnp.zeros((n, 1, w_cout), h1p_ref.dtype)
    h1p_ref[:, h + 1:h + 2, :] = jnp.zeros((n, 1, w_cout), h1p_ref.dtype)
    h1p_ref[:, 1:h + 1, :] = h1.astype(h1p_ref.dtype).reshape(n, h, w_cout)
    h2 = bn_relu(conv3x3(h1p_ref, bw2_ref), g2_ref, be2_ref)

    out_ref[...] = h2.astype(out_ref.dtype)


def _banded_weight(w_hwio, width):
    """(3, 3, Ci, Co) conv kernel -> (3, width*Ci, width*Co) per-kh banded matmul weight.

    For each kh tap, the kw taps and the padding=1 zero border along W are encoded as a
    block-Toeplitz band over W, so one kh tap of the conv becomes one matmul whose
    output is already laid out as lane-dense (W, Co).
    TODO(synk): W-tile the band (1-column halo per tile) for large W, where the full
    band's MXU waste (~W/3) and bw2 size (~W^2*Cout^2) become prohibitive.
    """
    _, _, ci, co = w_hwio.shape
    wi = jnp.arange(width)[:, None]                     # input column
    wo = jnp.arange(width)[None, :]                     # output column
    kw = wi - wo + 1                                    # kw tap index, valid in [0, 2]
    valid = ((kw >= 0) & (kw <= 2)).astype(w_hwio.dtype)
    band = w_hwio[:, jnp.clip(kw, 0, 2), :, :]          # (3, W, W, Ci, Co)=(kh,wi,wo,ci,co)
    band = band * valid[None, :, :, None, None]
    band = jnp.transpose(band, (0, 1, 3, 2, 4))         # (kh, wi, ci, wo, co)
    return band.reshape(3, width * ci, width * co)


@jax.jit
def double_convolution(x_nchw, params):
    """Pallas implementation of DoubleConvolution.forward. x_nchw: (N, Cin, H, W) f32."""
    w1, b1, g1, be1, w2, b2, g2, be2 = params
    # Conv biases are exactly cancelled by the training-mode BN batch-mean subtraction.
    del b1, b2
    n, cin, h, w = x_nchw.shape
    cout = w1.shape[-1]
    if w & (w - 1):
        # TODO(synk): support non-power-of-two W via a 0/1 replication-matmul BN reduce.
        raise NotImplementedError("W must be a power of two for the roll-tree BN reduce")

    # Layout plumbing (fuses into one XLA pass): NCHW -> lane-dense (N, H, W*Cin) bf16.
    # No host-side pad: the H halo is built inside the kernel's VMEM scratch.
    x = jnp.transpose(x_nchw, (0, 2, 3, 1)).reshape(n, h, w * cin).astype(jnp.bfloat16)
    bw1 = _banded_weight(w1, w).astype(jnp.bfloat16)    # (3, W*Cin,  W*Cout)
    bw2 = _banded_weight(w2, w).astype(jnp.bfloat16)    # (3, W*Cout, W*Cout)
    g1t, be1t, g2t, be2t = (jnp.tile(p.reshape(1, cout), (1, w)).astype(jnp.float32)
                            for p in (g1, be1, g2, be2))

    operands = (x, bw1, bw2, g1t, be1t, g2t, be2t)

    # VMEM budget derived from the actual footprint (gridless: no double buffering),
    # with headroom for compiler temporaries, capped below v7x's 64 MiB physical VMEM.
    footprint = sum(a.size * a.dtype.itemsize for a in operands)
    footprint += (n * h) * (w * cout) * 2                       # bf16 output slab
    footprint += n * (h + 2) * (w * cin + w * cout) * 2         # halo'd bf16 scratches
    vmem_bytes = int(min(max(4 * footprint, 16 << 20), 48 << 20))

    vmem = pl.BlockSpec(memory_space=pltpu.MemorySpace.VMEM)
    out2d = pl.pallas_call(
        functools.partial(_double_conv_kernel, width=w, cout=cout),
        out_shape=jax.ShapeDtypeStruct((n * h, w * cout), jnp.bfloat16),
        in_specs=[vmem] * len(operands),
        out_specs=vmem,
        scratch_shapes=[pltpu.VMEM((n, h + 2, w * cin), jnp.bfloat16),
                        pltpu.VMEM((n, h + 2, w * cout), jnp.bfloat16)],
        compiler_params=pltpu.CompilerParams(vmem_limit_bytes=vmem_bytes),
    )(*operands)

    # (N*H, W*Cout) bf16 -> NCHW f32 (module output dtype).
    return jnp.transpose(out2d.reshape(n, h, w, cout), (0, 3, 1, 2)).astype(jnp.float32)


def init_params(key, in_channels, out_channels):
    """Deterministic synthetic init mirroring nn.Conv2d / nn.BatchNorm2d shapes."""
    k1, k2, k3, k4 = jax.random.split(key, 4)
    fan1 = in_channels * 9
    fan2 = out_channels * 9
    bound1 = 1.0 / math.sqrt(fan1)
    bound2 = 1.0 / math.sqrt(fan2)
    # Conv weights stored in HWIO layout (3, 3, Cin, Cout).
    w1 = jax.random.uniform(k1, (3, 3, in_channels, out_channels), jnp.float32,
                            minval=-bound1, maxval=bound1)
    b1 = jax.random.uniform(k2, (out_channels,), jnp.float32, -bound1, bound1)
    w2 = jax.random.uniform(k3, (3, 3, out_channels, out_channels), jnp.float32,
                            minval=-bound2, maxval=bound2)
    b2 = jax.random.uniform(k4, (out_channels,), jnp.float32, -bound2, bound2)
    g1 = jnp.ones((out_channels,), jnp.float32)     # BatchNorm default: weight=1
    be1 = jnp.zeros((out_channels,), jnp.float32)   # bias=0
    g2 = jnp.ones((out_channels,), jnp.float32)
    be2 = jnp.zeros((out_channels,), jnp.float32)
    return (w1, b1, g1, be1, w2, b2, g2, be2)


def reference_forward(x_nchw, params):
    """Pure-JAX (XLA, f32) reference matching the PyTorch training-mode forward."""
    w1, b1, g1, be1, w2, b2, g2, be2 = params
    eps = 1e-5

    def conv_bn_relu(x, w_hwio, b, g, be):
        w_oihw = jnp.transpose(w_hwio, (3, 2, 0, 1))
        y = lax.conv_general_dilated(
            x, w_oihw, window_strides=(1, 1), padding=((1, 1), (1, 1)),
            dimension_numbers=("NCHW", "OIHW", "NCHW"))
        y = y + b[None, :, None, None]
        mean = jnp.mean(y, axis=(0, 2, 3), keepdims=True)
        var = jnp.mean((y - mean) ** 2, axis=(0, 2, 3), keepdims=True)
        y = (y - mean) * lax.rsqrt(var + eps)
        y = y * g[None, :, None, None] + be[None, :, None, None]
        return jnp.maximum(y, 0.0)

    x = conv_bn_relu(x_nchw, w1, b1, g1, be1)
    x = conv_bn_relu(x, w2, b2, g2, be2)
    return x


if __name__ == "__main__":
    key = jax.random.PRNGKey(0)
    k_x, k_p = jax.random.split(key)

    N, Cin, Cout, H, W = 2, 4, 8, 16, 16
    x = jax.random.normal(k_x, (N, Cin, H, W), jnp.float32)
    params = init_params(k_p, Cin, Cout)

    out = jax.block_until_ready(double_convolution(x, params))
    assert out.shape == (N, Cout, H, W), out.shape

    ref = reference_forward(x, params)
    max_err = float(jnp.max(jnp.abs(out - ref)))
    # bf16 MXU operands + bf16 output slab (per perf guidance) vs a pure-f32 reference;
    # BN renormalizes right after each conv so the absolute error stays ~1e-2.
    assert max_err < 1e-1, f"mismatch vs reference: max_err={max_err}"

    print("KERNEL_OK")
</pallas_src>

<mosaic_0001>
module attributes {stable_mosaic.version = 11 : i64} {
  func.func @_double_conv_kernel(%arg0: memref<2x16x64xbf16, #tpu.memory_space<vmem>>, %arg1: memref<3x64x128xbf16, #tpu.memory_space<vmem>>, %arg2: memref<3x128x128xbf16, #tpu.memory_space<vmem>>, %arg3: memref<1x128xf32, #tpu.memory_space<vmem>>, %arg4: memref<1x128xf32, #tpu.memory_space<vmem>>, %arg5: memref<1x128xf32, #tpu.memory_space<vmem>>, %arg6: memref<1x128xf32, #tpu.memory_space<vmem>>, %arg7: memref<32x128xbf16, #tpu.memory_space<vmem>>, %arg8: memref<2x18x64xbf16, #tpu.memory_space<vmem>>, %arg9: memref<2x18x128xbf16, #tpu.memory_space<vmem>>) attributes {dimension_semantics = [], scalar_prefetch = 0 : i64, scratch_operands = 2 : i64, tpu.core_type = #tpu.core_type<tc>} {
    %cst = arith.constant 0.000000e+00 : bf16
    %0 = vector.broadcast %cst : bf16 to vector<2x1x64xbf16>
    %c0 = arith.constant 0 : index
    %c0_0 = arith.constant 0 : index
    %c0_1 = arith.constant 0 : index
    %1 = vector.load %arg8[%c0, %c0_0, %c0_1] : memref<2x18x64xbf16, #tpu.memory_space<vmem>>, vector<2x1x64xbf16>
    tpu.vector_store %arg8[%c0, %c0_0, %c0_1], %0 {strides = array<i32>} : memref<2x18x64xbf16, #tpu.memory_space<vmem>>, vector<2x1x64xbf16>,
    %cst_2 = arith.constant 0.000000e+00 : bf16
    %2 = vector.broadcast %cst_2 : bf16 to vector<2x1x64xbf16>
    %c0_3 = arith.constant 0 : index
    %c17 = arith.constant 17 : index
    %c0_4 = arith.constant 0 : index
    %3 = vector.load %arg8[%c0_3, %c17, %c0_4] : memref<2x18x64xbf16, #tpu.memory_space<vmem>>, vector<2x1x64xbf16>
    tpu.vector_store %arg8[%c0_3, %c17, %c0_4], %2 {strides = array<i32>} : memref<2x18x64xbf16, #tpu.memory_space<vmem>>, vector<2x1x64xbf16>,
    %c0_5 = arith.constant 0 : index
    %c0_6 = arith.constant 0 : index
    %c0_7 = arith.constant 0 : index
    %4 = vector.load %arg0[%c0_5, %c0_6, %c0_7] : memref<2x16x64xbf16, #tpu.memory_space<vmem>>, vector<2x16x64xbf16>
    %c0_8 = arith.constant 0 : index
    %c1 = arith.constant 1 : index
    %c0_9 = arith.constant 0 : index
    %5 = vector.load %arg8[%c0_8, %c1, %c0_9] : memref<2x18x64xbf16, #tpu.memory_space<vmem>>, vector<2x16x64xbf16>
    tpu.vector_store %arg8[%c0_8, %c1, %c0_9], %4 {strides = array<i32>} : memref<2x18x64xbf16, #tpu.memory_space<vmem>>, vector<2x16x64xbf16>,
    %c0_10 = arith.constant 0 : index
    %c0_11 = arith.constant 0 : index
    %c0_12 = arith.constant 0 : index
    %6 = vector.load %arg8[%c0_10, %c0_11, %c0_12] : memref<2x18x64xbf16, #tpu.memory_space<vmem>>, vector<2x16x64xbf16>
    %7 = vector.shape_cast %6 : vector<2x16x64xbf16> to vector<32x64xbf16>
    %c0_13 = arith.constant 0 : index
    %c0_14 = arith.constant 0 : index
    %c0_15 = arith.constant 0 : index
    %8 = vector.load %arg1[%c0_13, %c0_14, %c0_15] : memref<3x64x128xbf16, #tpu.memory_space<vmem>>, vector<1x64x128xbf16>
    %9 = vector.shape_cast %8 : vector<1x64x128xbf16> to vector<64x128xbf16>
    %cst_16 = arith.constant dense<0.000000e+00> : vector<32x128xf32>
    %10 = tpu.matmul %7, %9, %cst_16 {dimension_numbers = #tpu.dot_dimension_numbers<[1], [0], [0], [1], [0, 0, 1, 1], [], []>} : vector<32x64xbf16>, vector<64x128xbf16>, vector<32x128xf32> -> vector<32x128xf32>
    %c0_17 = arith.constant 0 : index
    %c1_18 = arith.constant 1 : index
    %c0_19 = arith.constant 0 : index
    %11 = vector.load %arg8[%c0_17, %c1_18, %c0_19] : memref<2x18x64xbf16, #tpu.memory_space<vmem>>, vector<2x16x64xbf16>
    %12 = vector.shape_cast %11 : vector<2x16x64xbf16> to vector<32x64xbf16>
    %c1_20 = arith.constant 1 : index
    %c0_21 = arith.constant 0 : index
    %c0_22 = arith.constant 0 : index
    %13 = vector.load %arg1[%c1_20, %c0_21, %c0_22] : memref<3x64x128xbf16, #tpu.memory_space<vmem>>, vector<1x64x128xbf16>
    %14 = vector.shape_cast %13 : vector<1x64x128xbf16> to vector<64x128xbf16>
    %cst_23 = arith.constant dense<0.000000e+00> : vector<32x128xf32>
    %15 = tpu.matmul %12, %14, %cst_23 {dimension_numbers = #tpu.dot_dimension_numbers<[1], [0], [0], [1], [0, 0, 1, 1], [], []>} : vector<32x64xbf16>, vector<64x128xbf16>, vector<32x128xf32> -> vector<32x128xf32>
    %16 = arith.addf %10, %15 : vector<32x128xf32>
    %c0_24 = arith.constant 0 : index
    %c2 = arith.constant 2 : index
    %c0_25 = arith.constant 0 : index
    %17 = vector.load %arg8[%c0_24, %c2, %c0_25] : memref<2x18x64xbf16, #tpu.memory_space<vmem>>, vector<2x16x64xbf16>
    %18 = vector.shape_cast %17 : vector<2x16x64xbf16> to vector<32x64xbf16>
    %c2_26 = arith.constant 2 : index
    %c0_27 = arith.constant 0 : index
    %c0_28 = arith.constant 0 : index
    %19 = vector.load %arg1[%c2_26, %c0_27, %c0_28] : memref<3x64x128xbf16, #tpu.memory_space<vmem>>, vector<1x64x128xbf16>
    %20 = vector.shape_cast %19 : vector<1x64x128xbf16> to vector<64x128xbf16>
    %cst_29 = arith.constant dense<0.000000e+00> : vector<32x128xf32>
    %21 = tpu.matmul %18, %20, %cst_29 {dimension_numbers = #tpu.dot_dimension_numbers<[1], [0], [0], [1], [0, 0, 1, 1], [], []>} : vector<32x64xbf16>, vector<64x128xbf16>, vector<32x128xf32> -> vector<32x128xf32>
    %22 = arith.addf %16, %21 : vector<32x128xf32>
    %cst_30 = arith.constant dense<0.000000e+00> : vector<128xf32>
    %23 = vector.multi_reduction <add>, %22, %cst_30 [0] : vector<32x128xf32> to vector<128xf32>
    %24 = vector.shape_cast %23 : vector<128xf32> to vector<1x128xf32>
    %25 = arith.mulf %22, %22 : vector<32x128xf32>
    %cst_31 = arith.constant dense<0.000000e+00> : vector<128xf32>
    %26 = vector.multi_reduction <add>, %25, %cst_31 [0] : vector<32x128xf32> to vector<128xf32>
    %27 = vector.shape_cast %26 : vector<128xf32> to vector<1x128xf32>
    %c8_i32 = arith.constant 8 : i32
    %28 = tpu.dynamic_rotate %24 by %c8_i32 dim 1 : vector<1x128xf32>, i32 -> vector<1x128xf32>
    %29 = arith.addf %24, %28 : vector<1x128xf32>
    %c16_i32 = arith.constant 16 : i32
    %30 = tpu.dynamic_rotate %29 by %c16_i32 dim 1 : vector<1x128xf32>, i32 -> vector<1x128xf32>
    %31 = arith.addf %29, %30 : vector<1x128xf32>
    %c32_i32 = arith.constant 32 : i32
    %32 = tpu.dynamic_rotate %31 by %c32_i32 dim 1 : vector<1x128xf32>, i32 -> vector<1x128xf32>
    %33 = arith.addf %31, %32 : vector<1x128xf32>
    %c64_i32 = arith.constant 64 : i32
    %34 = tpu.dynamic_rotate %33 by %c64_i32 dim 1 : vector<1x128xf32>, i32 -> vector<1x128xf32>
    %35 = arith.addf %33, %34 : vector<1x128xf32>
    %cst_32 = arith.constant 0.001953125 : f32
    %36 = vector.broadcast %cst_32 : f32 to vector<1x128xf32>
    %37 = arith.mulf %35, %36 : vector<1x128xf32>
    %c8_i32_33 = arith.constant 8 : i32
    %38 = tpu.dynamic_rotate %27 by %c8_i32_33 dim 1 : vector<1x128xf32>, i32 -> vector<1x128xf32>
    %39 = arith.addf %27, %38 : vector<1x128xf32>
    %c16_i32_34 = arith.constant 16 : i32
    %40 = tpu.dynamic_rotate %39 by %c16_i32_34 dim 1 : vector<1x128xf32>, i32 -> vector<1x128xf32>
    %41 = arith.addf %39, %40 : vector<1x128xf32>
    %c32_i32_35 = arith.constant 32 : i32
    %42 = tpu.dynamic_rotate %41 by %c32_i32_35 dim 1 : vector<1x128xf32>, i32 -> vector<1x128xf32>
    %43 = arith.addf %41, %42 : vector<1x128xf32>
    %c64_i32_36 = arith.constant 64 : i32
    %44 = tpu.dynamic_rotate %43 by %c64_i32_36 dim 1 : vector<1x128xf32>, i32 -> vector<1x128xf32>
    %45 = arith.addf %43, %44 : vector<1x128xf32>
    %cst_37 = arith.constant 0.001953125 : f32
    %46 = vector.broadcast %cst_37 : f32 to vector<1x128xf32>
    %47 = arith.mulf %45, %46 : vector<1x128xf32>
    %48 = arith.mulf %37, %37 : vector<1x128xf32>
    %49 = arith.subf %47, %48 : vector<1x128xf32>
    %c0_38 = arith.constant 0 : index
    %c0_39 = arith.constant 0 : index
    %50 = vector.load %arg3[%c0_38, %c0_39] : memref<1x128xf32, #tpu.memory_space<vmem>>, vector<1x128xf32>
    %cst_40 = arith.constant 9.99999974E-6 : f32
    %51 = vector.broadcast %cst_40 : f32 to vector<1x128xf32>
    %52 = arith.addf %49, %51 : vector<1x128xf32>
    %53 = math.rsqrt %52 : vector<1x128xf32>
    %54 = arith.mulf %50, %53 : vector<1x128xf32>
    %c0_41 = arith.constant 0 : index
    %c0_42 = arith.constant 0 : index
    %55 = vector.load %arg4[%c0_41, %c0_42] : memref<1x128xf32, #tpu.memory_space<vmem>>, vector<1x128xf32>
    %56 = arith.mulf %37, %54 : vector<1x128xf32>
    %57 = arith.subf %55, %56 : vector<1x128xf32>
    %58 = vector.broadcast %54 : vector<1x128xf32> to vector<32x128xf32>
    %59 = arith.mulf %22, %58 : vector<32x128xf32>
    %60 = vector.broadcast %57 : vector<1x128xf32> to vector<32x128xf32>
    %61 = arith.addf %59, %60 : vector<32x128xf32>
    %cst_43 = arith.constant 0.000000e+00 : f32
    %62 = vector.broadcast %cst_43 : f32 to vector<32x128xf32>
    %63 = arith.maximumf %61, %62 : vector<32x128xf32>
    %cst_44 = arith.constant 0.000000e+00 : bf16
    %64 = vector.broadcast %cst_44 : bf16 to vector<2x1x128xbf16>
    %c0_45 = arith.constant 0 : index
    %c0_46 = arith.constant 0 : index
    %c0_47 = arith.constant 0 : index
    %65 = vector.load %arg9[%c0_45, %c0_46, %c0_47] : memref<2x18x128xbf16, #tpu.memory_space<vmem>>, vector<2x1x128xbf16>
    tpu.vector_store %arg9[%c0_45, %c0_46, %c0_47], %64 {strides = array<i32>} : memref<2x18x128xbf16, #tpu.memory_space<vmem>>, vector<2x1x128xbf16>,
    %cst_48 = arith.constant 0.000000e+00 : bf16
    %66 = vector.broadcast %cst_48 : bf16 to vector<2x1x128xbf16>
    %c0_49 = arith.constant 0 : index
    %c17_50 = arith.constant 17 : index
    %c0_51 = arith.constant 0 : index
    %67 = vector.load %arg9[%c0_49, %c17_50, %c0_51] : memref<2x18x128xbf16, #tpu.memory_space<vmem>>, vector<2x1x128xbf16>
    tpu.vector_store %arg9[%c0_49, %c17_50, %c0_51], %66 {strides = array<i32>} : memref<2x18x128xbf16, #tpu.memory_space<vmem>>, vector<2x1x128xbf16>,
    %68 = arith.truncf %63 : vector<32x128xf32> to vector<32x128xbf16>
    %69 = vector.shape_cast %68 : vector<32x128xbf16> to vector<2x16x128xbf16>
    %c0_52 = arith.constant 0 : index
    %c1_53 = arith.constant 1 : index
    %c0_54 = arith.constant 0 : index
    %70 = vector.load %arg9[%c0_52, %c1_53, %c0_54] : memref<2x18x128xbf16, #tpu.memory_space<vmem>>, vector<2x16x128xbf16>
    tpu.vector_store %arg9[%c0_52, %c1_53, %c0_54], %69 {strides = array<i32>} : memref<2x18x128xbf16, #tpu.memory_space<vmem>>, vector<2x16x128xbf16>,
    %c0_55 = arith.constant 0 : index
    %c0_56 = arith.constant 0 : index
    %c0_57 = arith.constant 0 : index
    %71 = vector.load %arg9[%c0_55, %c0_56, %c0_57] : memref<2x18x128xbf16, #tpu.memory_space<vmem>>, vector<2x16x128xbf16>
    %72 = vector.shape_cast %71 : vector<2x16x128xbf16> to vector<32x128xbf16>
    %c0_58 = arith.constant 0 : index
    %c0_59 = arith.constant 0 : index
    %c0_60 = arith.constant 0 : index
    %73 = vector.load %arg2[%c0_58, %c0_59, %c0_60] : memref<3x128x128xbf16, #tpu.memory_space<vmem>>, vector<1x128x128xbf16>
    %74 = vector.shape_cast %73 : vector<1x128x128xbf16> to vector<128x128xbf16>
    %cst_61 = arith.constant dense<0.000000e+00> : vector<32x128xf32>
    %75 = tpu.matmul %72, %74, %cst_61 {dimension_numbers = #tpu.dot_dimension_numbers<[1], [0], [0], [1], [0, 0, 1, 1], [], []>} : vector<32x128xbf16>, vector<128x128xbf16>, vector<32x128xf32> -> vector<32x128xf32>
    %c0_62 = arith.constant 0 : index
    %c1_63 = arith.constant 1 : index
    %c0_64 = arith.constant 0 : index
    %76 = vector.load %arg9[%c0_62, %c1_63, %c0_64] : memref<2x18x128xbf16, #tpu.memory_space<vmem>>, vector<2x16x128xbf16>
    %77 = vector.shape_cast %76 : vector<2x16x128xbf16> to vector<32x128xbf16>
    %c1_65 = arith.constant 1 : index
    %c0_66 = arith.constant 0 : index
    %c0_67 = arith.constant 0 : index
    %78 = vector.load %arg2[%c1_65, %c0_66, %c0_67] : memref<3x128x128xbf16, #tpu.memory_space<vmem>>, vector<1x128x128xbf16>
    %79 = vector.shape_cast %78 : vector<1x128x128xbf16> to vector<128x128xbf16>
    %cst_68 = arith.constant dense<0.000000e+00> : vector<32x128xf32>
    %80 = tpu.matmul %77, %79, %cst_68 {dimension_numbers = #tpu.dot_dimension_numbers<[1], [0], [0], [1], [0, 0, 1, 1], [], []>} : vector<32x128xbf16>, vector<128x128xbf16>, vector<32x128xf32> -> vector<32x128xf32>
    %81 = arith.addf %75, %80 : vector<32x128xf32>
    %c0_69 = arith.constant 0 : index
    %c2_70 = arith.constant 2 : index
    %c0_71 = arith.constant 0 : index
    %82 = vector.load %arg9[%c0_69, %c2_70, %c0_71] : memref<2x18x128xbf16, #tpu.memory_space<vmem>>, vector<2x16x128xbf16>
    %83 = vector.shape_cast %82 : vector<2x16x128xbf16> to vector<32x128xbf16>
    %c2_72 = arith.constant 2 : index
    %c0_73 = arith.constant 0 : index
    %c0_74 = arith.constant 0 : index
    %84 = vector.load %arg2[%c2_72, %c0_73, %c0_74] : memref<3x128x128xbf16, #tpu.memory_space<vmem>>, vector<1x128x128xbf16>
    %85 = vector.shape_cast %84 : vector<1x128x128xbf16> to vector<128x128xbf16>
    %cst_75 = arith.constant dense<0.000000e+00> : vector<32x128xf32>
    %86 = tpu.matmul %83, %85, %cst_75 {dimension_numbers = #tpu.dot_dimension_numbers<[1], [0], [0], [1], [0, 0, 1, 1], [], []>} : vector<32x128xbf16>, vector<128x128xbf16>, vector<32x128xf32> -> vector<32x128xf32>
    %87 = arith.addf %81, %86 : vector<32x128xf32>
    %cst_76 = arith.constant dense<0.000000e+00> : vector<128xf32>
    %88 = vector.multi_reduction <add>, %87, %cst_76 [0] : vector<32x128xf32> to vector<128xf32>
    %89 = vector.shape_cast %88 : vector<128xf32> to vector<1x128xf32>
    %90 = arith.mulf %87, %87 : vector<32x128xf32>
    %cst_77 = arith.constant dense<0.000000e+00> : vector<128xf32>
    %91 = vector.multi_reduction <add>, %90, %cst_77 [0] : vector<32x128xf32> to vector<128xf32>
    %92 = vector.shape_cast %91 : vector<128xf32> to vector<1x128xf32>
    %c8_i32_78 = arith.constant 8 : i32
    %93 = tpu.dynamic_rotate %89 by %c8_i32_78 dim 1 : vector<1x128xf32>, i32 -> vector<1x128xf32>
    %94 = arith.addf %89, %93 : vector<1x128xf32>
    %c16_i32_79 = arith.constant 16 : i32
    %95 = tpu.dynamic_rotate %94 by %c16_i32_79 dim 1 : vector<1x128xf32>, i32 -> vector<1x128xf32>
    %96 = arith.addf %94, %95 : vector<1x128xf32>
    %c32_i32_80 = arith.constant 32 : i32
    %97 = tpu.dynamic_rotate %96 by %c32_i32_80 dim 1 : vector<1x128xf32>, i32 -> vector<1x128xf32>
    %98 = arith.addf %96, %97 : vector<1x128xf32>
    %c64_i32_81 = arith.constant 64 : i32
    %99 = tpu.dynamic_rotate %98 by %c64_i32_81 dim 1 : vector<1x128xf32>, i32 -> vector<1x128xf32>
    %100 = arith.addf %98, %99 : vector<1x128xf32>
    %cst_82 = arith.constant 0.001953125 : f32
    %101 = vector.broadcast %cst_82 : f32 to vector<1x128xf32>
    %102 = arith.mulf %100, %101 : vector<1x128xf32>
    %c8_i32_83 = arith.constant 8 : i32
    %103 = tpu.dynamic_rotate %92 by %c8_i32_83 dim 1 : vector<1x128xf32>, i32 -> vector<1x128xf32>
    %104 = arith.addf %92, %103 : vector<1x128xf32>
    %c16_i32_84 = arith.constant 16 : i32
    %105 = tpu.dynamic_rotate %104 by %c16_i32_84 dim 1 : vector<1x128xf32>, i32 -> vector<1x128xf32>
    %106 = arith.addf %104, %105 : vector<1x128xf32>
    %c32_i32_85 = arith.constant 32 : i32
    %107 = tpu.dynamic_rotate %106 by %c32_i32_85 dim 1 : vector<1x128xf32>, i32 -> vector<1x128xf32>
    %108 = arith.addf %106, %107 : vector<1x128xf32>
    %c64_i32_86 = arith.constant 64 : i32
    %109 = tpu.dynamic_rotate %108 by %c64_i32_86 dim 1 : vector<1x128xf32>, i32 -> vector<1x128xf32>
    %110 = arith.addf %108, %109 : vector<1x128xf32>
    %cst_87 = arith.constant 0.001953125 : f32
    %111 = vector.broadcast %cst_87 : f32 to vector<1x128xf32>
    %112 = arith.mulf %110, %111 : vector<1x128xf32>
    %113 = arith.mulf %102, %102 : vector<1x128xf32>
    %114 = arith.subf %112, %113 : vector<1x128xf32>
    %c0_88 = arith.constant 0 : index
    %c0_89 = arith.constant 0 : index
    %115 = vector.load %arg5[%c0_88, %c0_89] : memref<1x128xf32, #tpu.memory_space<vmem>>, vector<1x128xf32>
    %cst_90 = arith.constant 9.99999974E-6 : f32
    %116 = vector.broadcast %cst_90 : f32 to vector<1x128xf32>
    %117 = arith.addf %114, %116 : vector<1x128xf32>
    %118 = math.rsqrt %117 : vector<1x128xf32>
    %119 = arith.mulf %115, %118 : vector<1x128xf32>
    %c0_91 = arith.constant 0 : index
    %c0_92 = arith.constant 0 : index
    %120 = vector.load %arg6[%c0_91, %c0_92] : memref<1x128xf32, #tpu.memory_space<vmem>>, vector<1x128xf32>
    %121 = arith.mulf %102, %119 : vector<1x128xf32>
    %122 = arith.subf %120, %121 : vector<1x128xf32>
    %123 = vector.broadcast %119 : vector<1x128xf32> to vector<32x128xf32>
    %124 = arith.mulf %87, %123 : vector<32x128xf32>
    %125 = vector.broadcast %122 : vector<1x128xf32> to vector<32x128xf32>
    %126 = arith.addf %124, %125 : vector<32x128xf32>
    %cst_93 = arith.constant 0.000000e+00 : f32
    %127 = vector.broadcast %cst_93 : f32 to vector<32x128xf32>
    %128 = arith.maximumf %126, %127 : vector<32x128xf32>
    %129 = arith.truncf %128 : vector<32x128xf32> to vector<32x128xbf16>
    %c0_94 = arith.constant 0 : index
    %c0_95 = arith.constant 0 : index
    %130 = vector.load %arg7[%c0_94, %c0_95] : memref<32x128xbf16, #tpu.memory_space<vmem>>, vector<32x128xbf16>
    tpu.vector_store %arg7[%c0_94, %c0_95], %129 {strides = array<i32>} : memref<32x128xbf16, #tpu.memory_space<vmem>>, vector<32x128xbf16>,
    return
  }
}

</mosaic_0001>

<bundles_post_ra>
// kernel: double_convolution.1
= control target key start
LH: loop header
LB: loop body
LE: loop exit
PB: predicated region body
PF: predicated region fallthrough
CT: control target
= control target key end

     0   :  { %vm27_vm0 = vcmask 516096   ;;  %vm28_vm1 = vsmask.f32 256  ;;  %v30_v3 = vld [vmem:[#allocation2] sm:$0x1]  ;;  %vm90_vm5 = vcmask 519168   ;;  %s1656_s1 = inlined_call_operand.vmem [shape: bf16[3,64,128], index: 1, kind: input, shape index: {}]   ;;  %s1657_s0 = inlined_call_operand.vmem [shape: bf16[2,16,64], index: 0, kind: input, shape index: {}]   ;;  %s1658_s2 = inlined_call_operand.vmem [shape: bf16[3,128,128], index: 2, kind: input, shape index: {}]   ;;  %s1659_s3 = inlined_call_operand.vmem [shape: f32[1,128], index: 3, kind: input, shape index: {}]   ;;  %s1660_s4 = inlined_call_operand.vmem [shape: f32[1,128], index: 4, kind: input, shape index: {}]   ;;  %s1661_s5 = inlined_call_operand.vmem [shape: f32[1,128], index: 5, kind: input, shape index: {}]   ;;  %s1662_s6 = inlined_call_operand.vmem [shape: f32[1,128], index: 6, kind: input, shape index: {}]   ;;  %s1663_s7 = inlined_call_operand.vmem [shape: bf16[32,128], index: 7, kind: output, shape index: {}]  }
   0x1   :  { %v1222_v0 = vld [vmem:[%s1656_s1 + $0x18] sm:$0xff]  ;;  %vm36_vm2 = vsmask.f32 7938  ;;  %v1221_v4 = vld [vmem:[%s1656_s1 + $0x10] sm:$0xff]  ;;  %vm1348_vm3 = vmand %vm27_vm0, %vm28_vm1  ;;  %vm48_vm4 = vsmask.f32 4368 }
   0x2   :  { %v1230_v1 = vld [vmem:[%s1656_s1 + $0x58] sm:$0xff]  ;;  %281 = vmatpush.bf16.msra.mxu1 %v1222_v0  ;;  %v1229_v5 = vld [vmem:[%s1656_s1 + $0x50] sm:$0xff]  ;;  %v44_v8 = vld [vmem:[%s1657_s0] sm:$0xf]  ;;  %v31_v10 = vsel %vm1348_vm3, 0, %v30_v3  ;;  %vm302_vm9 = vcmask 1042432  }
   0x3   :  { %v1226_v2 = vld [vmem:[%s1656_s1 + $0x38] sm:$0xff]  ;;  %368 = vmatpush.bf16.msra.mxu2 %v1230_v1  ;;  %v1225_v6 = vld [vmem:[%s1656_s1 + $0x30] sm:$0xff]  ;;  %v1220_v9 = vld [vmem:[%s1656_s1 + $0x8] sm:$0xff]  ;;  %v51_v13 = vshrl.u32 %v44_v8, 16  ;;  %v54_v14 = vshll.u32 %v44_v8, 16  ;;  %vm303_vm10 = vcmask 1046532  }
   0x4   :  { %222 = vmatpush.bf16.msra.mxu0 %v1226_v2  ;;  %vm1362_vm6 = vmand %vm27_vm0, %vm36_vm2  ;;  %v45_v12 = vld [vmem:[%s1657_s0 + $0x4] sm:$0xf]  ;;  %32 = vst [vmem:[#allocation2] sm:$0x1] %v31_v10  ;;  %v38_v17 = vld [vmem:[#allocation2 + $0x8] sm:$0x1] }
   0x5   :  { %v59_v15 = vshrl.u32 %v45_v12, 16  ;;  %v62_v16 = vshll.u32 %v45_v12, 16  ;;  %v1228_v18 = vld [vmem:[%s1656_s1 + $0x48] sm:$0xff]  ;;  %v53_v19 = vrot.slane %v51_v13, 7  ;;  %v39_v21 = vsel %vm1362_vm6, 0, %v38_v17  ;;  %vm1384_vm7 = vmor %vm28_vm1, %vm48_vm4  ;;  %v1219_v35 = vld [vmem:[%s1656_s1] sm:$0xff] }
   0x6   :  { %282 = vmatpush.bf16.msra.mxu1 %v1221_v4  ;;  %v1224_v20 = vld [vmem:[%s1656_s1 + $0x28] sm:$0xff]  ;;  %40 = vst [vmem:[#allocation2 + $0x8] sm:$0x1] %v39_v21  ;;  %v41_v34 = vld [vmem:[#allocation2 + $0x14] sm:$0x1]  ;;  %v1227_v36 = vld [vmem:[%s1656_s1 + $0x40] sm:$0xff] }
   0x7   :  { %369 = vmatpush.bf16.msra.mxu2 %v1229_v5  ;;  %v33_v22 = vld [vmem:[#allocation2 + $0xc] sm:$0x1]  ;;  %v61_v23 = vrot.slane %v59_v15, 7  ;;  %v46_v25 = vld [vmem:[%s1657_s0 + $0x8] sm:$0xf]  ;;  %v57_v27 = vrot.slane %v53_v19, 4  ;;  %v56_v30 = vor.u32 %v54_v14, %v53_v19  ;;  %vm1399_vm8 = vmand %vm90_vm5, %vm36_vm2 }
   0x8   :  { %223 = vmatpush.bf16.msra.mxu0 %v1225_v6  ;;  %v34_v24 = vsel %vm1348_vm3, 0, %v33_v22  ;;  %v47_v28 = vld [vmem:[%s1657_s0 + $0xc] sm:$0xf]  ;;  %v68_v29 = vshrl.u32 %v46_v25, 16  ;;  %v71_v32 = vshll.u32 %v46_v25, 16  ;;  %v42_v40 = vsel %vm1362_vm6, 0, %v41_v34  ;;  %vm1422_vm13 = vmor %vm302_vm9, %vm303_vm10 }
   0x9   :  { %35 = vst [vmem:[#allocation2 + $0xc] sm:$0x1] %v34_v24  ;;  %v64_v31 = vor.u32 %v62_v16, %v61_v23  ;;  %v76_v33 = vshrl.u32 %v47_v28, 16  ;;  %v79_v39 = vshll.u32 %v47_v28, 16  ;;  %v66_v42 = vrot.slane %v61_v23, 4  ;;  %v1223_v43 = vld [vmem:[%s1656_s1 + $0x20] sm:$0xff] }
   0xa   :  { %283 = vmatpush.bf16.msra.mxu1 %v1220_v9  ;;  %v70_v38 = vrot.slane %v68_v29, 7  ;;  %43 = vst [vmem:[#allocation2 + $0x14] sm:$0x1] %v42_v40  ;;  %vm121_vm11 = vsmask.f32 3328  ;;  %vm211_vm12 = vcmask 523264  }
   0xb   :  { %370 = vmatpush.bf16.msra.mxu2 %v1228_v18  ;;  %v65_v41 = vsel %vm1384_vm7, %v57_v27, %v64_v31  ;;  %v78_v44 = vrot.slane %v76_v33, 7  ;;  %v92_v45 = vld [vmem:[#allocation2] sm:$0xf]  ;;  %vm122_vm14 = vsmask.f32 7440  ;;  %s1284_s1 = smov 8  }
   0xc   :  { %224 = vmatpush.bf16.msra.mxu0 %v1224_v20  ;;  %96 = vst.msk [vmem:[#allocation2 + $0x4] sm:$0xf] %vm90_vm5, %v65_v41  ;;  %v73_v46 = vor.u32 %v71_v32, %v70_v38  ;;  %v74_v47 = vrot.slane %v70_v38, 4  ;;  %v93_v48 = vsel %vm1399_vm8, %v56_v30, %v92_v45  ;;  %vm1432_vm15 = vmor %vm121_vm11, %vm122_vm14  ;;  %s1285_s9 = smov 16   ;;  %s1286_s10 = smov 32   ;;  %vm471_vm0 = vcmask 1040384  }
   0xd   :  { %v81_v49 = vor.u32 %v79_v39, %v78_v44  ;;  %94 = vst [vmem:[#allocation2] sm:$0xf] %v93_v48  ;;  %v97_v50 = vld [vmem:[#allocation2 + $0x8] sm:$0x1]  ;;  %v83_v53 = vrot.slane %v78_v44, 4  ;;  %s1287_s11 = smov 64   ;;  %vm479_vm4 = vmand %vm471_vm0, %vm36_vm2 }
   0xe   :  { %284 = vmatpush.bf16.msra.mxu1 %v1219_v35  ;;  %v98_v51 = vsel %vm1348_vm3, %v66_v42, %v97_v50 }
   0xf   :  { %371 = vmatpush.bf16.msra.mxu2 %v1227_v36  ;;  %v82_v52 = vsel %vm1384_vm7, %v74_v47, %v81_v49  ;;  %99 = vst [vmem:[#allocation2 + $0x8] sm:$0x1] %v98_v51 }
  0x10   :  { %225 = vmatpush.bf16.msra.mxu0 %v1223_v43  ;;  %v100_v54 = vld [vmem:[#allocation2 + $0xc] sm:$0xf]  ;;  %103 = vst.msk [vmem:[#allocation2 + $0x10] sm:$0xf] %vm90_vm5, %v82_v52 }
  0x11   :  { %v101_v55 = vsel %vm1399_vm8, %v73_v46, %v100_v54  ;;  %v104_v56 = vld [vmem:[#allocation2 + $0x14] sm:$0x1]  ;;  %vm530_vm8 = vcmask 1043456  }
  0x12   :  { %102 = vst [vmem:[#allocation2 + $0xc] sm:$0xf] %v101_v55  ;;  %v105_v58 = vsel %vm1348_vm3, %v83_v53, %v104_v56  ;;  %vm1482_vm3 = vmand %vm471_vm0, %vm28_vm1 }
  0x13   :  { %v108_v57 = vld [vmem:[#allocation2 + $0x4] sm:$0xf]  ;;  %106 = vst [vmem:[#allocation2 + $0x14] sm:$0x1] %v105_v58  ;;  %vm1580_vm9 = vmand %vm530_vm8, %vm36_vm2 }
  0x14   :  { %v307_v60 = vrot.slane %v108_v57, 5  ;;  %v134_v61 = vshll.u32 %v108_v57, 16  ;;  %v138_v62 = vshrl.u32 %v108_v57, 16  ;;  %v1217_v63 = vld [vmem:[#allocation2] sm:$0xff] }
  0x15   :  { %v296_v0 = vld [vmem:[#allocation2] sm:$0xe]  ;;  %1049 = vmatmul.msk.bf16.vlgmr.msra.gmra.mxu1 %vm211_vm12, %v1217_v63 }
  0x16   :  { %v107_v1 = vld [vmem:[#allocation2] sm:$0xf]  ;;  %v1051_v2 = vrot.slane %v296_v0, 9  ;;  %v309_v3 = vrot.slane %v307_v60, 4  ;;  %v119_v6 = vld [vmem:[#allocation2 + $0x8] sm:$0x1] }
  0x17   :  { %v125_v4 = vshrl.u32 %v107_v1, 16  ;;  %v128_v5 = vshll.u32 %v107_v1, 16  ;;  %v136_v7 = vrot.slane %v134_v61, 5  ;;  %v140_v8 = vrot.slane %v138_v62, 4  ;;  %v110_v16 = vld [vmem:[#allocation2 + $0x10] sm:$0xf] }
  0x18   :  { %v308_v9 = vsel %vm1422_vm13, %v1051_v2, %v307_v60  ;;  %v310_v10 = vrot.slane %v119_v6, 5  ;;  %v144_v15 = vshll.u32 %v119_v6, 16  ;;  %v158_v21 = vshll.u32 %v110_v16, 16 }
  0x19   :  { %v127_v11 = vrot.slane %v125_v4, 4  ;;  %v130_v12 = vrot.slane %v128_v5, 5  ;;  %v328_v13 = vunpack.c.l.b16 %v308_v9  ;;  %v141_v14 = vor.u32 %v140_v8, %v136_v7  ;;  %v109_v20 = vld [vmem:[#allocation2 + $0xc] sm:$0xf] }
  0x1a   :  { %v311_v17 = vsel %vm1422_vm13, %v309_v3, %v310_v10  ;;  %v146_v24 = vrot.slane %v144_v15, 5  ;;  %v149_v25 = vshrl.u32 %v109_v20, 16  ;;  %v297_v28 = vld [vmem:[#allocation2 + $0xc] sm:$0xe]  ;;  %v314_v29 = vrot.slane %v110_v16, 5 }
  0x1b   :  { %v131_v19 = vor.u32 %v130_v12, %v127_v11  ;;  %v329_v22 = vunpack.c.l.b16 %v311_v17  ;;  %v142_v23 = vrot.slane %v141_v14, 4  ;;  %v120_v32 = vld [vmem:[#allocation2 + $0x14] sm:$0x1]  ;;  %v152_v36 = vshll.u32 %v109_v20, 16  ;;  %v1218_v48 = vld [vmem:[#allocation2 + $0xc] sm:$0xff] }
  0x1c   :  { %v151_v35 = vrot.slane %v149_v25, 4  ;;  %v1052_v38 = vrot.slane %v297_v28, 9  ;;  %v160_v39 = vrot.slane %v158_v21, 5  ;;  %v162_v40 = vshrl.u32 %v110_v16, 16 }
  0x1d   :  { %v132_v27 = vrot.slane %v131_v19, 4  ;;  %v332_v30 = vpack.c.b16 %v329_v22, %v328_v13  ;;  %v147_v31 = vsel %vm1432_vm15, %v142_v23, %v146_v24  ;;  %v316_v41 = vrot.slane %v314_v29, 4 }
  0x1e   :  { %v182_v34 = vunpack.c.l.b16 %v147_v31  ;;  %v317_v42 = vrot.slane %v120_v32, 5  ;;  %v154_v43 = vrot.slane %v152_v36, 5  ;;  %v168_v44 = vshll.u32 %v120_v32, 16 }
  0x1f   :  { %v137_v33 = vsel %vm1432_vm15, %v132_v27, %v136_v7  ;;  %1077 = vmatmul.msk.bf16.vlgmr.msra.gmra.mxu2 %vm211_vm12, %v332_v30  ;;  %v164_v46 = vrot.slane %v162_v40, 4  ;;  %v315_v50 = vsel %vm1422_vm13, %v1052_v38, %v314_v29 }
  0x20   :  { %v181_v37 = vunpack.c.l.b16 %v137_v33  ;;  %v155_v47 = vor.u32 %v154_v43, %v151_v35  ;;  %v318_v51 = vsel %vm1422_vm13, %v316_v41, %v317_v42  ;;  %v170_v53 = vrot.slane %v168_v44, 5 }
  0x21   :  { %v165_v49 = vor.u32 %v164_v46, %v160_v39  ;;  %v330_v55 = vunpack.c.l.b16 %v315_v50  ;;  %v331_v56 = vunpack.c.l.b16 %v318_v51 }
  0x22   :  { %v185_v45 = vpack.c.b16 %v182_v34, %v181_v37  ;;  %v156_v52 = vrot.slane %v155_v47, 4 }
  0x23   :  { %v166_v54 = vrot.slane %v165_v49, 4  ;;  %v333_v60 = vpack.c.b16 %v331_v56, %v330_v55 }
  0x24   :  { %1023 = vmatmul.msk.bf16.vlgmr.msra.gmra.mxu0 %vm211_vm12, %v185_v45  ;;  %v161_v57 = vsel %vm1432_vm15, %v156_v52, %v160_v39 }
  0x25   :  { %1050 = vmatmul.msk.bf16.gmra.mxu1 %vm211_vm12, %v1218_v48  ;;  %v171_v58 = vsel %vm1432_vm15, %v166_v54, %v170_v53  ;;  %v183_v61 = vunpack.c.l.b16 %v161_v57  ;;  %v473_v57 = vld [vmem:[#allocation3] sm:$0x1] }
  0x26   :  { %v184_v62 = vunpack.c.l.b16 %v171_v58  ;;  %v476_v58 = vld [vmem:[#allocation3 + $0xc] sm:$0x1] }
  0x28   :  { %v186_v63 = vpack.c.b16 %v184_v62, %v183_v61  ;;  %v477_v61 = vsel %vm1482_vm3, 0, %v476_v58  ;;  %v480_v62 = vld [vmem:[#allocation3 + $0x8] sm:$0x1] }
  0x29   :  { %478 = vst [vmem:[#allocation3 + $0xc] sm:$0x1] %v477_v61 }
  0x2f   :  { %1078 = vmatmul.msk.bf16.gmra.mxu2 %vm211_vm12, %v333_v60  ;;  %v474_v60 = vsel %vm1482_vm3, 0, %v473_v57 }
  0x30   :  { %475 = vst [vmem:[#allocation3] sm:$0x1] %v474_v60 }
  0x34   :  { %1024 = vmatmul.msk.bf16.gmra.mxu0 %vm211_vm12, %v186_v63  ;;  %v483_v63 = vld [vmem:[#allocation3 + $0x14] sm:$0x1] }
  0x92   :  { %v286_v0 = vpop.f32.mrf.mxu1 }
  0x9a   :  { %v288_v3 = vpop.f32.mrf.mxu1 }
  0xa1   :  { %v227_v1 = vpop.f32.mrf.mxu0 }
  0xa2   :  { %v373_v2 = vpop.f32.mrf.mxu2  ;;  %v291_v6 = vpop.f32.mrf.mxu1  ;;  %v287_v9 = vadd.f32 %v286_v0, %v227_v1  ;;  %v481_v0 = vsel %vm479_vm4, 0, %v480_v62  ;;  %v484_v1 = vsel %vm479_vm4, 0, %v483_v63 }
  0xa3   :  { %482 = vst [vmem:[#allocation3 + $0x8] sm:$0x1] %v481_v0 }
  0xa4   :  { %v1455_v13 = vadd.f32 %v373_v2, %v287_v9  ;;  %485 = vst [vmem:[#allocation3 + $0x14] sm:$0x1] %v484_v1 }
  0xa6   :  { %v396_v19 = vmul.f32 %v1455_v13, %v1455_v13 }
  0xa9   :  { %v229_v4 = vpop.f32.mrf.mxu0 }
  0xaa   :  { %v375_v5 = vpop.f32.mrf.mxu2  ;;  %v289_v7 = vadd.f32 %v288_v3, %v229_v4  ;;  %v293_v16 = vpop.f32.mrf.mxu1  ;;  %v1240_v4 = vld [vmem:[%s1658_s2 + $0x38] sm:$0xff] }
  0xab   :  { %768 = vmatpush.bf16.msrb.mxu0 %v1240_v4  ;;  %1268 = vmatpush.bf16.msrb.mxu2 %v1240_v4 }
  0xac   :  { %v1453_v12 = vadd.f32 %v375_v5, %v289_v7 }
  0xae   :  { %v397_v15 = vmul.f32 %v1453_v12, %v1453_v12  ;;  %v387_v20 = vadd.f32 %v1453_v12, %v1455_v13 }
  0xb0   :  { %v400_v24 = vadd.f32 %v397_v15, %v396_v19  ;;  %v1256_v15 = vld [vmem:[%s1658_s2 + $0xb8] sm:$0xff] }
  0xb1   :  { %v232_v8 = vpop.f32.mrf.mxu0  ;;  %880 = vmatpush.bf16.msrb.mxu1 %v1256_v15  ;;  %v1248_v19 = vld [vmem:[%s1658_s2 + $0x78] sm:$0xff] }
  0xb2   :  { %v292_v10 = vadd.f32 %v291_v6, %v232_v8  ;;  %v378_v11 = vpop.f32.mrf.mxu2  ;;  %v1239_v8 = vld [vmem:[%s1658_s2 + $0x30] sm:$0xff]  ;;  %689 = vmatpush.bf16.msra.mxu3 %v1248_v19 }
  0xb3   :  { %769 = vmatpush.bf16.msrb.mxu0 %v1239_v8  ;;  %1269 = vmatpush.bf16.msrb.mxu2 %v1239_v8 }
  0xb4   :  { %v1457_v14 = vadd.f32 %v378_v11, %v292_v10 }
  0xb6   :  { %v398_v21 = vmul.f32 %v1457_v14, %v1457_v14  ;;  %v388_v25 = vadd.f32 %v387_v20, %v1457_v14  ;;  %v1255_v20 = vld [vmem:[%s1658_s2 + $0xb0] sm:$0xff] }
  0xb7   :  { %881 = vmatpush.bf16.msrb.mxu1 %v1255_v20 }
  0xb8   :  { %v401_v28 = vadd.f32 %v400_v24, %v398_v21  ;;  %v1237_v21 = vld [vmem:[%s1658_s2 + $0x20] sm:$0xff]  ;;  %v1236_v24 = vld [vmem:[%s1658_s2 + $0x18] sm:$0xff] }
  0xb9   :  { %v234_v17 = vpop.f32.mrf.mxu0 }
  0xba   :  { %v294_v22 = vadd.f32 %v293_v16, %v234_v17  ;;  %v380_v23 = vpop.f32.mrf.mxu2  ;;  %v1238_v16 = vld [vmem:[%s1658_s2 + $0x28] sm:$0xff] }
  0xbb   :  { %770 = vmatpush.bf16.msrb.mxu0 %v1238_v16  ;;  %1270 = vmatpush.bf16.msrb.mxu2 %v1238_v16  ;;  %v536_v16 = vld [vmem:[#allocation3 + $0x8] sm:$0x1] }
  0xbc   :  { %v1468_v27 = vadd.f32 %v380_v23, %v294_v22  ;;  %v1247_v22 = vld [vmem:[%s1658_s2 + $0x70] sm:$0xff]  ;;  %v1254_v23 = vld [vmem:[%s1658_s2 + $0xa8] sm:$0xff] }
  0xbd   :  { %690 = vmatpush.bf16.msra.mxu3 %v1247_v22  ;;  %882 = vmatpush.bf16.msrb.mxu1 %v1254_v23  ;;  %v543_v22 = vld [vmem:[#allocation3 + $0x14] sm:$0x1] }
  0xbe   :  { %v389_v29 = vadd.f32 %v388_v25, %v1468_v27  ;;  %v399_v30 = vmul.f32 %v1468_v27, %v1468_v27 }
  0xbf   :  { %771 = vmatpush.bf16.msrb.mxu0 %v1237_v21  ;;  %1271 = vmatpush.bf16.msrb.mxu2 %v1237_v21 }
  0xc0   :  { %v390_v31 = vrot.slane %v389_v29, 4  ;;  %v402_v32 = vadd.f32 %v401_v28, %v399_v30  ;;  %v1253_v30 = vld [vmem:[%s1658_s2 + $0xa0] sm:$0xff] }
  0xc1   :  { %883 = vmatpush.bf16.msrb.mxu1 %v1253_v30  ;;  %v532_v30 = vld [vmem:[#allocation3] sm:$0xf] }
  0xc2   :  { %v403_v33 = vrot.slane %v402_v32, 4  ;;  %v391_v34 = vadd.f32 %v390_v31, %v389_v29  ;;  %v1246_v29 = vld [vmem:[%s1658_s2 + $0x68] sm:$0xff] }
  0xc3   :  { %772 = vmatpush.bf16.msrb.mxu0 %v1236_v24  ;;  %1272 = vmatpush.bf16.msrb.mxu2 %v1236_v24 }
  0xc4   :  { %v392_v35 = vrot.slane %v391_v34, 2  ;;  %v404_v36 = vadd.f32 %v403_v33, %v402_v32  ;;  %v1235_v32 = vld [vmem:[%s1658_s2 + $0x10] sm:$0xff]  ;;  %691 = vmatpush.bf16.msra.mxu3 %v1246_v29 }
  0xc6   :  { %v393_v37 = vadd.f32 %v392_v35, %v391_v34  ;;  %v405_v38 = vrot.slane %v404_v36, 2  ;;  %v1245_v34 = vld [vmem:[%s1658_s2 + $0x60] sm:$0xff]  ;;  %v1252_v35 = vld [vmem:[%s1658_s2 + $0x98] sm:$0xff] }
  0xc7   :  { %773 = vmatpush.bf16.msrb.mxu0 %v1235_v32  ;;  %1273 = vmatpush.bf16.msrb.mxu2 %v1235_v32 }
  0xc8   :  { %v394_v39 = vrot.slane %v393_v37, 1  ;;  %v406_v41 = vadd.f32 %v405_v38, %v404_v36  ;;  %v1234_v36 = vld [vmem:[%s1658_s2 + $0x8] sm:$0xff]  ;;  %692 = vmatpush.bf16.msra.mxu3 %v1245_v34  ;;  %884 = vmatpush.bf16.msrb.mxu1 %v1252_v35  ;;  %v1244_v38 = vld [vmem:[%s1658_s2 + $0x58] sm:$0xff]  ;;  %v539_v35 = vld [vmem:[#allocation3 + $0xc] sm:$0xf] }
  0xca   :  { %v395_v40 = vadd.f32 %v394_v39, %v393_v37  ;;  %v407_v42 = vrot.slane %v406_v41, 1  ;;  %v1251_v39 = vld [vmem:[%s1658_s2 + $0x90] sm:$0xff] }
  0xcb   :  { %774 = vmatpush.bf16.msrb.mxu0 %v1234_v36  ;;  %1274 = vmatpush.bf16.msrb.mxu2 %v1234_v36 }
  0xcc   :  { %409 = vrot.lane.b32.xlu0 %v395_v40, %s1284_s1  ;;  %v408_v43 = vadd.f32 %v407_v42, %v406_v41  ;;  %v1233_v42 = vld [vmem:[%s1658_s2] sm:$0xff]  ;;  %693 = vmatpush.bf16.msra.mxu3 %v1244_v38 }
  0xcd   :  { %885 = vmatpush.bf16.msrb.mxu1 %v1251_v39 }
  0xcf   :  { %775 = vmatpush.bf16.msrb.mxu0 %v1233_v42  ;;  %1275 = vmatpush.bf16.msrb.mxu2 %v1233_v42 }
  0xd4   :  { %422 = vrot.lane.b32.xlu0 %v408_v43, %s1284_s1 }
 0x13e   :  { %v410_v44 = vpop.permute.xlu0 %409 }
 0x13f   :  { %v411_v45 = vadd.f32 %v410_v44, %v395_v40  ;;  %v437_v40 = vld [vmem:[%s1659_s3] sm:$0x1] }
 0x141   :  { %412 = vrot.lane.b32.xlu1 %v411_v45, %s1285_s9 }
 0x146   :  { %v423_v46 = vpop.permute.xlu0 %422 }
 0x147   :  { %v424_v47 = vadd.f32 %v423_v46, %v408_v43  ;;  %v450_v46 = vld [vmem:[%s1660_s4] sm:$0x1] }
 0x149   :  { %425 = vrot.lane.b32.xlu1 %v424_v47, %s1285_s9 }
 0x1b3   :  { %v413_v48 = vpop.permute.xlu1 %412 }
 0x1b4   :  { %v414_v49 = vadd.f32 %v413_v48, %v411_v45  ;;  %v1243_v45 = vld [vmem:[%s1658_s2 + $0x50] sm:$0xff] }
 0x1b5   :  { %694 = vmatpush.bf16.msra.mxu3 %v1243_v45 }
 0x1b6   :  { %415 = vrot.lane.b32.xlu2 %v414_v49, %s1286_s10 }
 0x1bb   :  { %v426_v50 = vpop.permute.xlu1 %425 }
 0x1bc   :  { %v427_v51 = vadd.f32 %v426_v50, %v424_v47 }
 0x1be   :  { %428 = vrot.lane.b32.xlu2 %v427_v51, %s1286_s10 }
 0x210   :  { %v416_v52 = vpop.permute.xlu2 %415 }
 0x211   :  { %v417_v53 = vadd.f32 %v416_v52, %v414_v49  ;;  %v1250_v49 = vld [vmem:[%s1658_s2 + $0x88] sm:$0xff] }
 0x212   :  { %886 = vmatpush.bf16.msrb.mxu1 %v1250_v49 }
 0x213   :  { %418 = vrot.lane.b32.xlu0 %v417_v53, %s1287_s11 }
 0x218   :  { %v429_v54 = vpop.permute.xlu2 %428 }
 0x219   :  { %v430_v55 = vadd.f32 %v429_v54, %v427_v51  ;;  %v1242_v51 = vld [vmem:[%s1658_s2 + $0x48] sm:$0xff] }
 0x21a   :  { %695 = vmatpush.bf16.msra.mxu3 %v1242_v51 }
 0x21b   :  { %431 = vrot.lane.b32.xlu1 %v430_v55, %s1287_s11 }
 0x285   :  { %v419_v2 = vpop.permute.xlu0 %418 }
 0x286   :  { %v420_v3 = vadd.f32 %v419_v2, %v417_v53  ;;  %v1249_v53 = vld [vmem:[%s1658_s2 + $0x80] sm:$0xff] }
 0x287   :  { %887 = vmatpush.bf16.msrb.mxu1 %v1249_v53 }
 0x288   :  { %v1494_v5 = vmul.f32 0.001953125, %v420_v3 }
 0x28a   :  { %v435_v9 = vmul.f32 %v1494_v5, %v1494_v5 }
 0x28d   :  { %v432_v6 = vpop.permute.xlu1 %431 }
 0x28e   :  { %v433_v7 = vadd.f32 %v432_v6, %v430_v55 }
 0x290   :  { %v434_v10 = vmul.f32 0.001953125, %v433_v7 }
 0x292   :  { %v436_v11 = vsub.f32 %v434_v10, %v435_v9 }
 0x294   :  { %v438_v17 = vadd.f32 1e-05, %v436_v11 }
 0x296   :  { %1280 = vrsqrt.f32 %v438_v17  ;;  %vm445_vm5 = vweird.f32 %v438_v17 }
 0x29c   :  { %v1281_v25 = vpop.eup %1280 }
 0x29d   :  { %v440_v28 = vmul.f32 %v1281_v25, %v438_v17  ;;  %vm446_vm1 = vweird.f32 %v1281_v25 }
 0x29e   :  { %vm447_vm6 = vmor %vm445_vm5, %vm446_vm1 }
 0x29f   :  { %v441_v31 = vmul.f32 %v1281_v25, %v440_v28 }
 0x2a1   :  { %v442_v33 = vmul.f32 0.5, %v441_v31 }
 0x2a3   :  { %v443_v37 = vsub.f32 1.5, %v442_v33 }
 0x2a5   :  { %v444_v41 = vmul.f32 %v1281_v25, %v443_v37 }
 0x2a7   :  { %v448_v43 = vsel %vm447_vm6, %v1281_v25, %v444_v41 }
 0x2a8   :  { %v449_v44 = vmul.f32 %v448_v43, %v437_v40 }
 0x2aa   :  { %v451_v47 = vmul.f32 %v449_v44, %v1494_v5  ;;  %v454_v48 = vperm.slane %v449_v44, 0 }
 0x2ac   :  { %v452_v50 = vsub.f32 %v450_v46, %v451_v47  ;;  %v456_v52 = vmul.f32 %v454_v48, %v1455_v13  ;;  %v457_v54 = vmul.f32 %v454_v48, %v1453_v12  ;;  %v458_v55 = vmul.f32 %v454_v48, %v1457_v14  ;;  %v1241_v13 = vld [vmem:[%s1658_s2 + $0x40] sm:$0xff] }
 0x2ad   :  { %v459_v57 = vmul.f32 %v454_v48, %v1468_v27  ;;  %696 = vmatpush.bf16.msra.mxu3 %v1241_v13 }
 0x2ae   :  { %v461_v58 = vperm.slane %v452_v50, 0 }
 0x2b0   :  { %v463_v60 = vadd.f32 %v461_v58, %v456_v52  ;;  %v464_v61 = vadd.f32 %v461_v58, %v457_v54  ;;  %v465_v62 = vadd.f32 %v461_v58, %v458_v55  ;;  %v466_v63 = vadd.f32 %v461_v58, %v459_v57 }
 0x2b2   :  { %v467_v0 = vmax.f32 %v463_v60, 0.0  ;;  %v468_v1 = vmax.f32 %v464_v61, 0.0  ;;  %v469_v2 = vmax.f32 %v465_v62, 0.0  ;;  %v470_v3 = vmax.f32 %v466_v63, 0.0 }
 0x2b4   :  { %v486_v12 = vpack.c.bf16 %v467_v0, %v467_v0  ;;  %v487_v4 = vpack.c.bf16 %v468_v1, %v468_v1  ;;  %v488_v14 = vpack.c.bf16 %v469_v2, %v469_v2  ;;  %v489_v5 = vpack.c.bf16 %v470_v3, %v470_v3 }
 0x2b6   :  { %v491_v27 = vshrl.u32 %v486_v12, 16  ;;  %v499_v6 = vshrl.u32 %v487_v4, 16  ;;  %v508_v7 = vshrl.u32 %v488_v14, 16  ;;  %v516_v8 = vshrl.u32 %v489_v5, 16 }
 0x2b7   :  { %v494_v10 = vshll.u32 %v486_v12, 16  ;;  %v502_v15 = vshll.u32 %v487_v4, 16  ;;  %v511_v19 = vshll.u32 %v488_v14, 16  ;;  %v519_v21 = vshll.u32 %v489_v5, 16 }
 0x2b8   :  { %v493_v9 = vrot.slane %v491_v27, 7  ;;  %v501_v11 = vrot.slane %v499_v6, 7  ;;  %v510_v17 = vrot.slane %v508_v7, 7  ;;  %v518_v20 = vrot.slane %v516_v8, 7 }
 0x2ba   :  { %v496_v23 = vor.u32 %v494_v10, %v493_v9  ;;  %v497_v24 = vrot.slane %v493_v9, 4  ;;  %v504_v25 = vor.u32 %v502_v15, %v501_v11  ;;  %v506_v28 = vrot.slane %v501_v11, 4 }
 0x2bb   :  { %v513_v31 = vor.u32 %v511_v19, %v510_v17  ;;  %v514_v32 = vrot.slane %v510_v17, 4  ;;  %v521_v33 = vor.u32 %v519_v21, %v518_v20  ;;  %v523_v34 = vrot.slane %v518_v20, 4 }
 0x2bc   :  { %v505_v36 = vsel %vm1384_vm7, %v497_v24, %v504_v25  ;;  %v537_v37 = vsel %vm1482_vm3, %v506_v28, %v536_v16  ;;  %v533_v40 = vsel %vm1580_vm9, %v496_v23, %v532_v30 }
 0x2bd   :  { %v522_v38 = vsel %vm1384_vm7, %v514_v32, %v521_v33  ;;  %535 = vst [vmem:[#allocation3 + $0x4] sm:$0xf] %v505_v36  ;;  %v544_v39 = vsel %vm1482_vm3, %v523_v34, %v543_v22  ;;  %v540_v41 = vsel %vm1580_vm9, %v513_v31, %v539_v35 }
 0x2be   :  { %538 = vst [vmem:[#allocation3 + $0x8] sm:$0x1] %v537_v37 }
 0x2bf   :  { %542 = vst [vmem:[#allocation3 + $0x10] sm:$0xf] %v522_v38 }
 0x2c0   :  { %545 = vst [vmem:[#allocation3 + $0x14] sm:$0x1] %v544_v39 }
 0x2c1   :  { %534 = vst [vmem:[#allocation3] sm:$0xf] %v533_v40 }
 0x2c2   :  { %541 = vst [vmem:[#allocation3 + $0xc] sm:$0xf] %v540_v41 }
 0x2c4   :  { %v547_v42 = vld [vmem:[#allocation3 + $0x4] sm:$0xf] }
 0x2c5   :  { %v566_v43 = vld [vmem:[#allocation3 + $0x8] sm:$0x1]  ;;  %v795_v44 = vrot.slane %v547_v42, 5  ;;  %v578_v26 = vshll.u32 %v547_v42, 16  ;;  %v582_v45 = vshrl.u32 %v547_v42, 16 }
 0x2c6   :  { %v798_v47 = vrot.slane %v566_v43, 5  ;;  %v588_v52 = vshll.u32 %v566_v43, 16  ;;  %v549_v12 = vld [vmem:[#allocation3 + $0x10] sm:$0xf] }
 0x2c7   :  { %v797_v46 = vrot.slane %v795_v44, 4  ;;  %v580_v56 = vrot.slane %v578_v26, 5  ;;  %v584_v48 = vrot.slane %v582_v45, 4  ;;  %v802_v8 = vrot.slane %v549_v12, 5  ;;  %v567_v21 = vld [vmem:[#allocation3 + $0x14] sm:$0x1] }
 0x2c8   :  { %v1231_v49 = vld [vmem:[#allocation3] sm:$0xff]  ;;  %v590_v3 = vrot.slane %v588_v52, 5  ;;  %v602_v9 = vshll.u32 %v549_v12, 16  ;;  %v606_v11 = vshrl.u32 %v549_v12, 16  ;;  %v805_v29 = vrot.slane %v567_v21, 5 }
 0x2c9   :  { %v787_v50 = vld [vmem:[#allocation3] sm:$0xe]  ;;  %v1232_v53 = vld [vmem:[#allocation3 + $0xc] sm:$0xff]  ;;  %v799_v55 = vsel %vm1422_vm13, %v797_v46, %v798_v47  ;;  %776 = vmatmul.bf16.vlgmr.msrb.gmra.mxu0 %v1231_v49  ;;  %v585_v61 = vor.u32 %v584_v48, %v580_v56  ;;  %v804_v24 = vrot.slane %v802_v8, 4  ;;  %v612_v33 = vshll.u32 %v567_v21, 16 }
 0x2ca   :  { %v546_v51 = vld [vmem:[#allocation3] sm:$0xf]  ;;  %v1167_v54 = vrot.slane %v787_v50, 9  ;;  %v825_v60 = vunpack.c.l.b16 %v799_v55  ;;  %v548_v62 = vld [vmem:[#allocation3 + $0xc] sm:$0xf]  ;;  %781 = vmatmul.bf16.vlgmr.msrb.gmra.mxu2 %v1232_v53  ;;  %v604_v19 = vrot.slane %v602_v9, 5 }
 0x2cb   :  { %v569_v57 = vshrl.u32 %v546_v51, 16  ;;  %v572_v58 = vshll.u32 %v546_v51, 16  ;;  %v586_v2 = vrot.slane %v585_v61, 4  ;;  %v593_v14 = vshrl.u32 %v548_v62, 16  ;;  %v788_v22 = vld [vmem:[#allocation3 + $0xc] sm:$0xe] }
 0x2cc   :  { %v796_v63 = vsel %vm1422_vm13, %v1167_v54, %v795_v44  ;;  %v596_v5 = vshll.u32 %v548_v62, 16  ;;  %v608_v23 = vrot.slane %v606_v11, 4  ;;  %v1168_v28 = vrot.slane %v788_v22, 9 }
 0x2cd   :  { %v571_v13 = vrot.slane %v569_v57, 4  ;;  %v574_v0 = vrot.slane %v572_v58, 5  ;;  %v824_v1 = vunpack.c.l.b16 %v796_v63  ;;  %v591_v6 = vsel %vm1432_vm15, %v586_v2, %v590_v3 }
 0x2ce   :  { %v634_v10 = vunpack.c.l.b16 %v591_v6  ;;  %v595_v16 = vrot.slane %v593_v14, 4  ;;  %v598_v17 = vrot.slane %v596_v5, 5  ;;  %v609_v31 = vor.u32 %v608_v23, %v604_v19 }
 0x2cf   :  { %v575_v4 = vor.u32 %v574_v0, %v571_v13  ;;  %v828_v27 = vpack.c.b16 %v825_v60, %v824_v1  ;;  %v806_v32 = vsel %vm1422_vm13, %v804_v24, %v805_v29  ;;  %v803_v34 = vsel %vm1422_vm13, %v1168_v28, %v802_v8 }
 0x2d0   :  { %v599_v30 = vor.u32 %v598_v17, %v595_v16  ;;  %v610_v36 = vrot.slane %v609_v31, 4  ;;  %v827_v37 = vunpack.c.l.b16 %v806_v32  ;;  %v614_v38 = vrot.slane %v612_v33, 5 }
 0x2d1   :  { %v576_v7 = vrot.slane %v575_v4, 4  ;;  %888 = vmatmul.bf16.vlgmr.msrb.gmra.mxu1 %v828_v27  ;;  %v826_v39 = vunpack.c.l.b16 %v803_v34 }
 0x2d2   :  { %v600_v35 = vrot.slane %v599_v30, 4  ;;  %v615_v41 = vsel %vm1432_vm15, %v610_v36, %v614_v38 }
 0x2d3   :  { %v581_v15 = vsel %vm1432_vm15, %v576_v7, %v580_v56  ;;  %v829_v42 = vpack.c.b16 %v827_v37, %v826_v39  ;;  %v636_v44 = vunpack.c.l.b16 %v615_v41 }
 0x2d4   :  { %v633_v20 = vunpack.c.l.b16 %v581_v15  ;;  %v605_v40 = vsel %vm1432_vm15, %v600_v35, %v604_v19 }
 0x2d5   :  { %v635_v43 = vunpack.c.l.b16 %v605_v40 }
 0x2d6   :  { %v637_v25 = vpack.c.b16 %v634_v10, %v633_v20 }
 0x2d7   :  { %v638_v26 = vpack.c.b16 %v636_v44, %v635_v43 }
 0x2d8   :  { %697 = vmatmul.bf16.vlgmr.msra.gmra.mxu3 %v637_v25 }
 0x2e1   :  { %893 = vmatmul.bf16.gmra.mxu1 %v829_v42 }
 0x2e8   :  { %702 = vmatmul.bf16.gmra.mxu3 %v638_v26 }
 0x346   :  { %v777_v46 = vpop.f32.mrf.mxu0 }
 0x34d   :  { %v782_v48 = vpop.f32.mrf.mxu2 }
 0x34e   :  { %v889_v45 = vpop.f32.mrf.mxu1  ;;  %v779_v49 = vpop.f32.mrf.mxu0 }
 0x355   :  { %v784_v60 = vpop.f32.mrf.mxu2 }
 0x356   :  { %v891_v47 = vpop.f32.mrf.mxu1 }
 0x35b   :  { %v698_v59 = vpop.f32.mrf.mxu3 }
 0x35c   :  { %v778_v53 = vadd.f32 %v777_v46, %v698_v59 }
 0x35e   :  { %v894_v51 = vpop.f32.mrf.mxu1  ;;  %v1614_v55 = vadd.f32 %v889_v45, %v778_v53 }
 0x360   :  { %v912_v62 = vmul.f32 %v1614_v55, %v1614_v55 }
 0x363   :  { %v700_v56 = vpop.f32.mrf.mxu3 }
 0x364   :  { %v780_v50 = vadd.f32 %v779_v49, %v700_v56  ;;  %v953_v56 = vld [vmem:[%s1661_s5] sm:$0x1] }
 0x366   :  { %v1612_v18 = vadd.f32 %v891_v47, %v780_v50  ;;  %v896_v1 = vpop.f32.mrf.mxu1 }
 0x368   :  { %v913_v58 = vmul.f32 %v1612_v18, %v1612_v18  ;;  %v903_v63 = vadd.f32 %v1612_v18, %v1614_v55 }
 0x36a   :  { %v916_v2 = vadd.f32 %v913_v58, %v912_v62 }
 0x36b   :  { %v703_v52 = vpop.f32.mrf.mxu3 }
 0x36c   :  { %v783_v54 = vadd.f32 %v782_v48, %v703_v52 }
 0x36e   :  { %v1616_v57 = vadd.f32 %v894_v51, %v783_v54  ;;  %v966_v51 = vld [vmem:[%s1662_s6] sm:$0x1] }
 0x370   :  { %v914_v13 = vmul.f32 %v1616_v57, %v1616_v57  ;;  %v904_v3 = vadd.f32 %v903_v63, %v1616_v57 }
 0x372   :  { %v917_v4 = vadd.f32 %v916_v2, %v914_v13 }
 0x373   :  { %v705_v61 = vpop.f32.mrf.mxu3 }
 0x374   :  { %v785_v0 = vadd.f32 %v784_v60, %v705_v61 }
 0x376   :  { %v1627_v12 = vadd.f32 %v896_v1, %v785_v0 }
 0x378   :  { %v905_v14 = vadd.f32 %v904_v3, %v1627_v12  ;;  %v915_v5 = vmul.f32 %v1627_v12, %v1627_v12 }
 0x37a   :  { %v906_v27 = vrot.slane %v905_v14, 4  ;;  %v918_v6 = vadd.f32 %v917_v4, %v915_v5 }
 0x37c   :  { %v907_v7 = vadd.f32 %v906_v27, %v905_v14  ;;  %v919_v8 = vrot.slane %v918_v6, 4 }
 0x37e   :  { %v908_v9 = vrot.slane %v907_v7, 2  ;;  %v920_v10 = vadd.f32 %v919_v8, %v918_v6 }
 0x380   :  { %v909_v11 = vadd.f32 %v908_v9, %v907_v7  ;;  %v921_v15 = vrot.slane %v920_v10, 2 }
 0x382   :  { %v910_v16 = vrot.slane %v909_v11, 1  ;;  %v922_v17 = vadd.f32 %v921_v15, %v920_v10 }
 0x384   :  { %v911_v19 = vadd.f32 %v910_v16, %v909_v11  ;;  %v923_v20 = vrot.slane %v922_v17, 1 }
 0x386   :  { %925 = vrot.lane.b32.xlu2 %v911_v19, %s1284_s1  ;;  %v924_v21 = vadd.f32 %v923_v20, %v922_v17 }
 0x388   :  { %938 = vrot.lane.b32.xlu0 %v924_v21, %s1284_s1 }
 0x3e0   :  { %v926_v22 = vpop.permute.xlu2 %925 }
 0x3e1   :  { %v927_v23 = vadd.f32 %v926_v22, %v911_v19 }
 0x3e3   :  { %928 = vrot.lane.b32.xlu1 %v927_v23, %s1285_s9 }
 0x3fa   :  { %v939_v24 = vpop.permute.xlu0 %938 }
 0x3fb   :  { %v940_v25 = vadd.f32 %v939_v24, %v924_v21 }
 0x3fd   :  { %941 = vrot.lane.b32.xlu2 %v940_v25, %s1285_s9 }
 0x455   :  { %v929_v28 = vpop.permute.xlu1 %928 }
 0x456   :  { %v930_v29 = vadd.f32 %v929_v28, %v927_v23 }
 0x457   :  { %v942_v30 = vpop.permute.xlu2 %941 }
 0x458   :  { %v943_v31 = vadd.f32 %v942_v30, %v940_v25  ;;  %931 = vrot.lane.b32.xlu0 %v930_v29, %s1286_s10 }
 0x45a   :  { %944 = vrot.lane.b32.xlu1 %v943_v31, %s1286_s10 }
 0x4ca   :  { %v932_v32 = vpop.permute.xlu0 %931 }
 0x4cb   :  { %v933_v33 = vadd.f32 %v932_v32, %v930_v29 }
 0x4cc   :  { %v945_v34 = vpop.permute.xlu1 %944 }
 0x4cd   :  { %v946_v35 = vadd.f32 %v945_v34, %v943_v31  ;;  %934 = vrot.lane.b32.xlu2 %v933_v33, %s1287_s11 }
 0x4cf   :  { %947 = vrot.lane.b32.xlu0 %v946_v35, %s1287_s11 }
 0x527   :  { %v935_v36 = vpop.permute.xlu2 %934 }
 0x528   :  { %v936_v37 = vadd.f32 %v935_v36, %v933_v33 }
 0x52a   :  { %v937_v38 = vmul.f32 0.001953125, %v936_v37 }
 0x52c   :  { %v951_v41 = vmul.f32 %v937_v38, %v937_v38 }
 0x541   :  { %v948_v39 = vpop.permute.xlu0 %947 }
 0x542   :  { %v949_v40 = vadd.f32 %v948_v39, %v946_v35 }
 0x544   :  { %v950_v42 = vmul.f32 0.001953125, %v949_v40 }
 0x546   :  { %v952_v43 = vsub.f32 %v950_v42, %v951_v41 }
 0x548   :  { %v954_v44 = vadd.f32 1e-05, %v952_v43 }
 0x54a   :  { %1282 = vrsqrt.f32 %v954_v44  ;;  %vm961_vm7 = vweird.f32 %v954_v44 }
 0x550   :  { %v1283_v26 = vpop.eup %1282 }
 0x551   :  { %v956_v45 = vmul.f32 %v1283_v26, %v954_v44  ;;  %vm962_vm2 = vweird.f32 %v1283_v26 }
 0x552   :  { %vm963_vm10 = vmor %vm961_vm7, %vm962_vm2 }
 0x553   :  { %v957_v59 = vmul.f32 %v1283_v26, %v956_v45 }
 0x555   :  { %v958_v46 = vmul.f32 0.5, %v957_v59 }
 0x557   :  { %v959_v47 = vsub.f32 1.5, %v958_v46 }
 0x559   :  { %v960_v48 = vmul.f32 %v1283_v26, %v959_v47 }
 0x55b   :  { %v964_v49 = vsel %vm963_vm10, %v1283_v26, %v960_v48 }
 0x55c   :  { %v965_v50 = vmul.f32 %v964_v49, %v953_v56 }
 0x55e   :  { %v967_v52 = vmul.f32 %v965_v50, %v937_v38  ;;  %v970_v53 = vperm.slane %v965_v50, 0 }
 0x560   :  { %v968_v54 = vsub.f32 %v966_v51, %v967_v52  ;;  %v972_v58 = vmul.f32 %v970_v53, %v1614_v55  ;;  %v973_v60 = vmul.f32 %v970_v53, %v1612_v18  ;;  %v974_v61 = vmul.f32 %v970_v53, %v1616_v57 }
 0x561   :  { %v975_v62 = vmul.f32 %v970_v53, %v1627_v12 }
 0x562   :  { %v977_v63 = vperm.slane %v968_v54, 0 }
 0x564   :  { %v979_v13 = vadd.f32 %v977_v63, %v972_v58  ;;  %v980_v0 = vadd.f32 %v977_v63, %v973_v60  ;;  %v981_v1 = vadd.f32 %v977_v63, %v974_v61  ;;  %v982_v2 = vadd.f32 %v977_v63, %v975_v62 }
 0x566   :  { %v983_v3 = vmax.f32 %v979_v13, 0.0  ;;  %v984_v4 = vmax.f32 %v980_v0, 0.0  ;;  %v985_v14 = vmax.f32 %v981_v1, 0.0  ;;  %v986_v5 = vmax.f32 %v982_v2, 0.0 }
 0x568   :  { %v1260_v27 = vpack.c.bf16 %v984_v4, %v983_v3  ;;  %v1265_v6 = vpack.c.bf16 %v986_v5, %v985_v14 }
 0x56a   :  { %1261 = vst [vmem:[%s1663_s7] sm:$0xff] %v1260_v27  }
 0x56b   :  { %1267 = vst [vmem:[%s1663_s7 + $0x8] sm:$0xff] %v1265_v6  }

</bundles_post_ra>
